<compile_context>
chip_gen: v7x
topology: tpu7x:2x2x1
jax: 0.10.0
libtpu: 0.0.40
codegen_flags: <defaults>
</compile_context>

<pallas_src>
import functools

import jax
import jax.numpy as jnp
from jax import lax
from jax.experimental import pallas as pl
from jax.experimental.pallas import tpu as pltpu


def _link_predictor_kernel(xi_ref, xj_ref,
                           w0_ref, b0_ref,
                           w1_ref, b1_ref,
                           w2t_ref, b2_ref,
                           out_ref):
    w_dtype = w0_ref.dtype

    # Element-wise "link feature" in f32, rounded ONCE to the streaming dtype
    # before the MXU (tightens the bf16 path; identity for f32).         (VPU)
    x = xi_ref[...].astype(jnp.float32) * xj_ref[...].astype(jnp.float32)
    x = x.astype(w_dtype)

    # Hidden layer 0: relu(x @ W0 + b0)                   (MXU, f32 accumulate)
    h = jnp.dot(x, w0_ref[...], preferred_element_type=jnp.float32)
    h = jnp.maximum(h + b0_ref[...], 0.0)                 # f32 elementwise (v5e-safe)

    # Hidden layer 1: relu(h @ W1 + b1)
    h = jnp.dot(h.astype(w_dtype), w1_ref[...],
                preferred_element_type=jnp.float32)
    h = jnp.maximum(h + b1_ref[...], 0.0)

    # Output layer, computed transposed so the result is lane-dense:
    #   o[c, b] = sum_k W2^T[c, k] * h[b, k]  ==  (h @ W2)^T   ("NT" dot_general)
    o = lax.dot_general(w2t_ref[...], h.astype(w_dtype),
                        dimension_numbers=(((1,), (1,)), ((), ())),
                        preferred_element_type=jnp.float32)
    o = o + b2_ref[...]                                   # (out_ch, 1) lane-broadcast
    sig = jax.nn.sigmoid(o)                               # f32 sigmoid (EUP)
    out_ref[...] = sig.reshape(out_ref.shape).astype(out_ref.dtype)


def _round_up(x, m):
    return ((x + m - 1) // m) * m


def _vmem_capacity_bytes():
    """Generation-aware VMEM capacity; falls back to v7x's 64 MiB (tightest)."""
    try:
        info = pltpu.get_tpu_info()
        for attr in ("vmem_capacity_bytes", "vmem_size_bytes", "vmem_bytes"):
            v = getattr(info, attr, None)
            if v:
                return int(v)
    except Exception:
        pass
    return 64 * 1024 * 1024


@functools.partial(jax.jit, static_argnames=("block_b",))
def link_predictor_forward(x_i, x_j, params, *, block_b=None):
    """Fused forward pass of LinkPredictor (num_layers=3, eval mode).

    Pass bf16 x_i / x_j on v6e/v7x to halve the dominant HBM input traffic;
    accumulation stays f32 either way.
    """
    (w0, b0), (w1, b1), (w2, b2) = params
    N, in_ch = x_i.shape
    hid = w0.shape[1]
    out_ch = w2.shape[1]

    # Tile selection: big tiles amortize the ~0.35us/step pipeline overhead,
    # but keep >= 8 grid steps (>= 4 per TC on v7x, even count) so both
    # TensorCores stay busy and double-buffering hides the first DMA.
    if block_b is None:
        block_b = min(8192, max(128, _round_up(pl.cdiv(N, 8), 128)))
    assert block_b % 128 == 0, "block_b must be a multiple of 128 (lane-dense output)"

    # Ragged N: let Pallas handle the partial boundary block (no jnp.pad copy).
    nb = pl.cdiv(N, block_b)
    padded_n = nb * block_b

    in_dtype = x_i.dtype
    itemsize = jnp.dtype(in_dtype).itemsize

    # Cast the (tiny) params once: weights stream in the activation dtype,
    # biases stay f32 for the f32 accumulate/elementwise path.
    w0 = w0.astype(in_dtype)
    w1 = w1.astype(in_dtype)
    w2t = w2.astype(in_dtype).T                 # (out_ch, hid)
    b0 = b0.reshape(1, hid).astype(jnp.float32)
    b1 = b1.reshape(1, hid).astype(jnp.float32)
    b2 = b2.reshape(out_ch, 1).astype(jnp.float32)

    # VMEM working set: double-buffered streaming tiles + resident weights.
    vmem_est = (2 * 2 * block_b * in_ch * itemsize                # x_i, x_j tiles
                + 2 * out_ch * block_b * itemsize                 # output tiles
                + 2 * (in_ch * hid + hid * hid + out_ch * hid) * itemsize
                + 2 * (2 * hid + out_ch) * 4)
    vmem_cap = _vmem_capacity_bytes()
    assert vmem_est < 0.75 * vmem_cap, (
        "working set too large for VMEM; shrink block_b or k-tile the hidden dim")
    # Explicit scoped-VMEM limit so large tiles don't trip the 16/32 MiB defaults.
    vmem_limit = int(min(vmem_cap, max(2 * vmem_est, 32 * 1024 * 1024)))

    grid = (nb,)

    feat_spec = pl.BlockSpec((block_b, in_ch), lambda i: (i, 0))
    # Constant operands: same block index every step -> fetched once by the pipeline.
    w0_spec = pl.BlockSpec((in_ch, hid), lambda i: (0, 0))
    b0_spec = pl.BlockSpec((1, hid), lambda i: (0, 0))
    w1_spec = pl.BlockSpec((hid, hid), lambda i: (0, 0))
    b1_spec = pl.BlockSpec((1, hid), lambda i: (0, 0))
    w2t_spec = pl.BlockSpec((out_ch, hid), lambda i: (0, 0))
    b2_spec = pl.BlockSpec((out_ch, 1), lambda i: (0, 0))
    # Lane-dense output: (nb, out_ch, block_b); one (1, out_ch, block_b) block per step.
    out_spec = pl.BlockSpec((1, out_ch, block_b), lambda i: (i, 0, 0))

    # Advisory cost hint for XLA's scheduler (kernel is bandwidth-bound).
    flops = 2 * N * (in_ch * hid + hid * hid + hid * out_ch) + 4 * N * hid
    bytes_accessed = (2 * N * in_ch * itemsize + N * out_ch * itemsize
                      + (in_ch * hid + hid * hid + hid * out_ch) * itemsize)
    cost = pl.CostEstimate(flops=int(flops),
                           transcendentals=int(N * out_ch),
                           bytes_accessed=int(bytes_accessed))

    out3 = pl.pallas_call(
        _link_predictor_kernel,
        out_shape=jax.ShapeDtypeStruct((nb, out_ch, block_b), in_dtype),
        grid_spec=pltpu.PrefetchScalarGridSpec(
            num_scalar_prefetch=0,
            grid=grid,
            in_specs=[feat_spec, feat_spec,
                      w0_spec, b0_spec,
                      w1_spec, b1_spec,
                      w2t_spec, b2_spec],
            out_specs=out_spec,
        ),
        compiler_params=pltpu.CompilerParams(
            dimension_semantics=("parallel",),   # batch axis shards across v7x's 2 TCs
            vmem_limit_bytes=vmem_limit),
        cost_estimate=cost,
    )(x_i, x_j, w0, b0, w1, b1, w2t, b2)

    # (nb, out_ch, block_b) -> (N, out_ch): free layout plumbing in the wrapper.
    # Keep the [:N] slice — the padded tail rows of the boundary block are garbage.
    out = jnp.transpose(out3, (0, 2, 1)).reshape(padded_n, out_ch)
    return out[:N]


def init_params(key, in_channels, hidden_channels, out_channels, num_layers):
    """Deterministic PyTorch-like (Kaiming-uniform) init. Weights are [in, out]."""
    assert num_layers == 3, "this script instantiates num_layers=3"
    dims = [in_channels, hidden_channels, hidden_channels, out_channels]
    params = []
    for li in range(num_layers):
        fan_in, fan_out = dims[li], dims[li + 1]
        key, kw, kb = jax.random.split(key, 3)
        bound = 1.0 / jnp.sqrt(jnp.float32(fan_in))
        w = jax.random.uniform(kw, (fan_in, fan_out), jnp.float32, -bound, bound)
        b = jax.random.uniform(kb, (1, fan_out), jnp.float32, -bound, bound)
        params.append((w, b))
    return params


def reference_forward(x_i, x_j, params):
    """Plain-JAX reference matching the PyTorch forward (eval mode)."""
    x = x_i * x_j
    for (w, b) in params[:-1]:
        x = jnp.maximum(x @ w + b, 0.0)
    w, b = params[-1]
    return jax.nn.sigmoid(x @ w + b)


if __name__ == "__main__":
    # Small shapes consistent with the module: a batch of candidate links,
    # in_channels=32, hidden_channels=32, out_channels=1, num_layers=3.
    N = 1000                                   # deliberately NOT a block_b multiple
    in_channels, hidden_channels, out_channels, num_layers = 32, 32, 1, 3

    key = jax.random.PRNGKey(0)
    key, k_i, k_j, k_p = jax.random.split(key, 4)
    x_i = jax.random.normal(k_i, (N, in_channels), jnp.float32)
    x_j = jax.random.normal(k_j, (N, in_channels), jnp.float32)
    params = init_params(k_p, in_channels, hidden_channels, out_channels, num_layers)

    ref = reference_forward(x_i, x_j, params)

    # f32 path (auto block_b: >=8 grid steps, no wrapper-side padding copy).
    out = link_predictor_forward(x_i, x_j, params)
    out = jax.block_until_ready(out)
    assert out.shape == (N, out_channels)
    assert jnp.allclose(out, ref, atol=1e-5, rtol=1e-5), "f32 mismatch vs reference"

    # bf16 streaming path (recommended on v6e/v7x): halves HBM traffic for the
    # dominant x_i/x_j streams, f32 accumulation.
    out_bf = link_predictor_forward(x_i.astype(jnp.bfloat16),
                                    x_j.astype(jnp.bfloat16),
                                    params)
    out_bf = jax.block_until_ready(out_bf)
    assert out_bf.shape == (N, out_channels)
    assert jnp.allclose(out_bf.astype(jnp.float32), ref, atol=3e-2), \
        "bf16 mismatch vs reference"

    # Explicit larger tile (grid still even, exercises the partial boundary block).
    out_big = link_predictor_forward(x_i, x_j, params, block_b=512)
    out_big = jax.block_until_ready(out_big)
    assert jnp.allclose(out_big, ref, atol=1e-5, rtol=1e-5), "block_b=512 mismatch"

    print("KERNEL_OK")
</pallas_src>

<mosaic_0001>
module attributes {stable_mosaic.version = 11 : i64} {
  func.func @_link_predictor_kernel(%arg0: i32, %arg1: memref<128x32xf32, #tpu.memory_space<vmem>>, %arg2: memref<128x32xf32, #tpu.memory_space<vmem>>, %arg3: memref<32x32xf32, #tpu.memory_space<vmem>>, %arg4: memref<1x32xf32, #tpu.memory_space<vmem>>, %arg5: memref<32x32xf32, #tpu.memory_space<vmem>>, %arg6: memref<1x32xf32, #tpu.memory_space<vmem>>, %arg7: memref<1x32xf32, #tpu.memory_space<vmem>>, %arg8: memref<1x1xf32, #tpu.memory_space<vmem>>, %arg9: memref<1x1x128xf32, #tpu.memory_space<vmem>>) attributes {dimension_semantics = [#tpu.dimension_semantics<parallel>], iteration_bounds = array<i64: 8>, scalar_prefetch = 0 : i64, scratch_operands = 0 : i64, tpu.core_type = #tpu.core_type<tc>, window_params = [{transform_indices = @transform_0, window_bounds = array<i64: 128, 32>}, {transform_indices = @transform_1, window_bounds = array<i64: 128, 32>}, {pipeline_mode = #tpu.pipeline_mode<synchronous>, transform_indices = @transform_2, window_bounds = array<i64: 32, 32>}, {pipeline_mode = #tpu.pipeline_mode<synchronous>, transform_indices = @transform_3, window_bounds = array<i64: 1, 32>}, {pipeline_mode = #tpu.pipeline_mode<synchronous>, transform_indices = @transform_4, window_bounds = array<i64: 32, 32>}, {pipeline_mode = #tpu.pipeline_mode<synchronous>, transform_indices = @transform_5, window_bounds = array<i64: 1, 32>}, {pipeline_mode = #tpu.pipeline_mode<synchronous>, transform_indices = @transform_6, window_bounds = array<i64: 1, 32>}, {pipeline_mode = #tpu.pipeline_mode<synchronous>, transform_indices = @transform_7, window_bounds = array<i64: 1, 1>}, {transform_indices = @transform_8, window_bounds = array<i64: 1, 1, 128>}]} {
    %c0 = arith.constant 0 : index
    %c0_0 = arith.constant 0 : index
    %0 = vector.load %arg1[%c0, %c0_0] : memref<128x32xf32, #tpu.memory_space<vmem>>, vector<128x32xf32>
    %c0_1 = arith.constant 0 : index
    %c0_2 = arith.constant 0 : index
    %1 = vector.load %arg2[%c0_1, %c0_2] : memref<128x32xf32, #tpu.memory_space<vmem>>, vector<128x32xf32>
    %2 = arith.mulf %0, %1 : vector<128x32xf32>
    %c0_3 = arith.constant 0 : index
    %c0_4 = arith.constant 0 : index
    %3 = vector.load %arg3[%c0_3, %c0_4] : memref<32x32xf32, #tpu.memory_space<vmem>>, vector<32x32xf32>
    %cst = arith.constant dense<0.000000e+00> : vector<128x32xf32>
    %4 = tpu.matmul %2, %3, %cst {dimension_numbers = #tpu.dot_dimension_numbers<[1], [0], [0], [1], [0, 0, 1, 1], [], []>} : vector<128x32xf32>, vector<32x32xf32>, vector<128x32xf32> -> vector<128x32xf32>
    %c0_5 = arith.constant 0 : index
    %c0_6 = arith.constant 0 : index
    %5 = vector.load %arg4[%c0_5, %c0_6] : memref<1x32xf32, #tpu.memory_space<vmem>>, vector<1x32xf32>
    %6 = vector.broadcast %5 : vector<1x32xf32> to vector<128x32xf32>
    %7 = arith.addf %4, %6 : vector<128x32xf32>
    %cst_7 = arith.constant 0.000000e+00 : f32
    %8 = vector.broadcast %cst_7 : f32 to vector<128x32xf32>
    %9 = arith.maximumf %7, %8 : vector<128x32xf32>
    %c0_8 = arith.constant 0 : index
    %c0_9 = arith.constant 0 : index
    %10 = vector.load %arg5[%c0_8, %c0_9] : memref<32x32xf32, #tpu.memory_space<vmem>>, vector<32x32xf32>
    %cst_10 = arith.constant dense<0.000000e+00> : vector<128x32xf32>
    %11 = tpu.matmul %9, %10, %cst_10 {dimension_numbers = #tpu.dot_dimension_numbers<[1], [0], [0], [1], [0, 0, 1, 1], [], []>} : vector<128x32xf32>, vector<32x32xf32>, vector<128x32xf32> -> vector<128x32xf32>
    %c0_11 = arith.constant 0 : index
    %c0_12 = arith.constant 0 : index
    %12 = vector.load %arg6[%c0_11, %c0_12] : memref<1x32xf32, #tpu.memory_space<vmem>>, vector<1x32xf32>
    %13 = vector.broadcast %12 : vector<1x32xf32> to vector<128x32xf32>
    %14 = arith.addf %11, %13 : vector<128x32xf32>
    %cst_13 = arith.constant 0.000000e+00 : f32
    %15 = vector.broadcast %cst_13 : f32 to vector<128x32xf32>
    %16 = arith.maximumf %14, %15 : vector<128x32xf32>
    %c0_14 = arith.constant 0 : index
    %c0_15 = arith.constant 0 : index
    %17 = vector.load %arg7[%c0_14, %c0_15] : memref<1x32xf32, #tpu.memory_space<vmem>>, vector<1x32xf32>
    %cst_16 = arith.constant dense<0.000000e+00> : vector<1x128xf32>
    %18 = tpu.matmul %17, %16, %cst_16 {dimension_numbers = #tpu.dot_dimension_numbers<[1], [1], [0], [0], [0, 0, 1, 0], [], []>} : vector<1x32xf32>, vector<128x32xf32>, vector<1x128xf32> -> vector<1x128xf32>
    %c0_17 = arith.constant 0 : index
    %c0_18 = arith.constant 0 : index
    %19 = vector.load %arg8[%c0_17, %c0_18] : memref<1x1xf32, #tpu.memory_space<vmem>>, vector<1x1xf32>
    %20 = vector.broadcast %19 : vector<1x1xf32> to vector<1x128xf32>
    %21 = arith.addf %18, %20 : vector<1x128xf32>
    %22 = arith.negf %21 : vector<1x128xf32>
    %23 = math.exp %22 : vector<1x128xf32>
    %cst_19 = arith.constant 1.000000e+00 : f32
    %24 = vector.broadcast %cst_19 : f32 to vector<1x128xf32>
    %25 = arith.addf %24, %23 : vector<1x128xf32>
    %26 = arith.divf %24, %25 : vector<1x128xf32>
    %27 = vector.shape_cast %26 : vector<1x128xf32> to vector<1x1x128xf32>
    %c0_20 = arith.constant 0 : index
    %c0_21 = arith.constant 0 : index
    %c0_22 = arith.constant 0 : index
    %28 = vector.load %arg9[%c0_20, %c0_21, %c0_22] : memref<1x1x128xf32, #tpu.memory_space<vmem>>, vector<1x1x128xf32>
    tpu.vector_store %arg9[%c0_20, %c0_21, %c0_22], %27 {strides = array<i32>} : memref<1x1x128xf32, #tpu.memory_space<vmem>>, vector<1x1x128xf32>,
    return
  }
  func.func @transform_0(%arg0: i32) -> (i32, i32) {
    %c0_i32 = arith.constant 0 : i32
    %c0_i32_0 = arith.constant 0 : i32
    return %arg0, %c0_i32 : i32, i32
  }
  func.func @transform_1(%arg0: i32) -> (i32, i32) {
    %c0_i32 = arith.constant 0 : i32
    %c0_i32_0 = arith.constant 0 : i32
    return %arg0, %c0_i32 : i32, i32
  }
  func.func @transform_2(%arg0: i32) -> (i32, i32) {
    %c0_i32 = arith.constant 0 : i32
    %c0_i32_0 = arith.constant 0 : i32
    %c0_i32_1 = arith.constant 0 : i32
    return %c0_i32, %c0_i32_0 : i32, i32
  }
  func.func @transform_3(%arg0: i32) -> (i32, i32) {
    %c0_i32 = arith.constant 0 : i32
    %c0_i32_0 = arith.constant 0 : i32
    %c0_i32_1 = arith.constant 0 : i32
    return %c0_i32, %c0_i32_0 : i32, i32
  }
  func.func @transform_4(%arg0: i32) -> (i32, i32) {
    %c0_i32 = arith.constant 0 : i32
    %c0_i32_0 = arith.constant 0 : i32
    %c0_i32_1 = arith.constant 0 : i32
    return %c0_i32, %c0_i32_0 : i32, i32
  }
  func.func @transform_5(%arg0: i32) -> (i32, i32) {
    %c0_i32 = arith.constant 0 : i32
    %c0_i32_0 = arith.constant 0 : i32
    %c0_i32_1 = arith.constant 0 : i32
    return %c0_i32, %c0_i32_0 : i32, i32
  }
  func.func @transform_6(%arg0: i32) -> (i32, i32) {
    %c0_i32 = arith.constant 0 : i32
    %c0_i32_0 = arith.constant 0 : i32
    %c0_i32_1 = arith.constant 0 : i32
    return %c0_i32, %c0_i32_0 : i32, i32
  }
  func.func @transform_7(%arg0: i32) -> (i32, i32) {
    %c0_i32 = arith.constant 0 : i32
    %c0_i32_0 = arith.constant 0 : i32
    %c0_i32_1 = arith.constant 0 : i32
    return %c0_i32, %c0_i32_0 : i32, i32
  }
  func.func @transform_8(%arg0: i32) -> (i32, i32, i32) {
    %c0_i32 = arith.constant 0 : i32
    %c0_i32_0 = arith.constant 0 : i32
    %c0_i32_1 = arith.constant 0 : i32
    return %arg0, %c0_i32, %c0_i32_0 : i32, i32, i32
  }
}

</mosaic_0001>

<bundles_post_ra>
// kernel: link_predictor_forward.1
= control target key start
LH: loop header
LB: loop body
LE: loop exit
PB: predicated region body
PF: predicated region fallthrough
CT: control target
= control target key end

     0   :  { %s1743_s0 = inlined_call_operand.vmem [shape: f32[1000,32], index: 0, kind: input, shape index: {}]   ;;  %s1744_s1 = inlined_call_operand.vmem [shape: f32[1000,32], index: 1, kind: input, shape index: {}]   ;;  %s1745_s2 = inlined_call_operand.vmem [shape: f32[32,32], index: 2, kind: input, shape index: {}]   ;;  %s1746_s3 = inlined_call_operand.vmem [shape: f32[1,32], index: 3, kind: input, shape index: {}]   ;;  %s1747_s4 = inlined_call_operand.vmem [shape: f32[32,32], index: 4, kind: input, shape index: {}]   ;;  %s1748_s5 = inlined_call_operand.vmem [shape: f32[1,32], index: 5, kind: input, shape index: {}]   ;;  %s1749_s6 = inlined_call_operand.vmem [shape: f32[1,32], index: 6, kind: input, shape index: {}]   ;;  %s1750_s7 = inlined_call_operand.<no memory space> [shape: f32[1,1], index: 7, kind: input, shape index: {}]   ;;  %s1751_s8 = inlined_call_operand.hbm [shape: f32[8,1,128], index: 8, kind: output, shape index: {}]  }
   0x1   :  { %v13_v0 = vstv %s1750_s7 }
   0x2   :  { %14 = vst [vmem:[#allocation2] sm:$0x1] %v13_v0 }
   0x3   :  { %15 = vsyncpa [#allocation4], 0 }
   0x4   :  { %17 = vsyncpa [#allocation4 + $0x1], 0  ;;  %s1509_s29 = smov 0   ;;  %s1511_s30 = smov 0  }
   0x5   :  { %s1513_s9 = smov 0   ;;  %s1515_s10 = smov 0  }
   0x6 LB: > { %s1076_s7 = sadd.s32 4294967295, %s1454_s10   ;;  %s1077_s11 = sadd.s32 4294967294, %s1454_s10   ;;  %s1454_s10 = sphi %s1515_s10, %s1759_s10   ;;  %s1450_s9 = sphi %s1513_s9, %s1758_s9   ;;  %s1446_s30 = sphi %s1511_s30, %s1757_s30   ;;  %s1442_s29 = sphi %s1509_s29, %s1756_s29  }
   0x7   : > { %s1532_s12 = sadd.s32 1, %s1454_s10   ;;  %s208_s13 = sadd.s32 1, %s1450_s9 }
   0x8   : > { %s205_s14 = ssub.s32 %s1454_s10, %s1532_s12  ;;  %p218_p0 = scmp.ne.s32.totalorder %s1450_s9, %s1446_s30 }
   0x9   : > { %p206_p1 = scmp.eq.s32.totalorder %s205_s14, 0  ;;  %p219_p2 = scmp.eq.s32.totalorder %s1076_s7, 7 }
   0xa   : > { %p224_p3 = scmp.ne.s32.totalorder %s1446_s30, %s1442_s29  ;;  %p225_p4 = scmp.eq.s32.totalorder %s1077_s11, 7 }
   0xb   : > { %s1542_s15 = scalar_select %p206_p1, %s1450_s9, %s208_s13  }
   0xc   : > { %p1544_p5 = por %p219_p2, %p218_p0  ;;  %p1548_p6 = por %p225_p4, %p224_p3 }
   0xd   : > { %p1080_p7 = scmp.ge.s32.totalorder %s1454_s10, 1  ;;  %p295_p8 = scmp.lt.s32.totalorder %s1454_s10, 9 }
   0xf   : > { %p296_p9 = pnand %p1080_p7, %p295_p8 }
  0x10   : > { %v417_v1 = vld [vmem:[%s1745_s2] sm:$0xff] (!%p296_p9)  ;;  %v418_v2 = vld [vmem:[%s1745_s2 + $0x8] sm:$0xff] (!%p296_p9)  ;;  %v419_v3 = vld [vmem:[%s1745_s2 + $0x10] sm:$0xff] (!%p296_p9)  ;;  %s1563_s24 = sshll.u32 (!%p296_p9), %s1076_s7, 4  ;;  %vm428_vm0 = vcmask (!%p296_p9), 261120   ;;  %vm1457_vm1 = vmmov (!%p296_p9), 0  }
  0x11   : > { %299 = sbr.rel (%p296_p9) target bundleno = 787 (0x313), region = 52  ;;  %v1296_v4 = vpack.c.bf16 (!%p296_p9), %v418_v2, %v417_v1  ;;  %v420_v5 = vld [vmem:[%s1745_s2 + $0x18] sm:$0xff] (!%p296_p9)  ;;  %p346_p10 = scmp.lt.s32.totalorder (!%p296_p9), %s1563_s24, 124  ;;  %v638_v7 = vld [vmem:[%s1747_s4] sm:$0xff] (!%p296_p9)  ;;  %v639_v8 = vld [vmem:[%s1747_s4 + $0x8] sm:$0xff] (!%p296_p9) }
  0x12   : > { %v1300_v6 = vpack.c.bf16 (!%p296_p9), %v420_v5, %v419_v3  ;;  %v1304_v9 = vpack.c.bf16 (!%p296_p9), %v639_v8, %v638_v7  ;;  %v640_v10 = vld [vmem:[%s1747_s4 + $0x10] sm:$0xff] (!%p296_p9)  ;;  %v641_v11 = vld [vmem:[%s1747_s4 + $0x18] sm:$0xff] (!%p296_p9)  ;;  %v1085_v61 = vld [vmem:[%s1746_s3] ss:$0 sm:$0xff] (!%p296_p9)  ;;  %s1701_s26 = scalar_lea.hbm (!%p296_p9), %s1751_s8, %s1563_s24  ;;  %s1460_s11 = smov (!%p296_p9), [#allocation3]  }
  0x13   : > { %1297 = vmatprep.subr.bf16.mxu1 (!%p296_p9), %v1296_v4  ;;  %v1308_v24 = vpack.c.bf16 (!%p296_p9), %v641_v11, %v640_v10  ;;  %vm1665_vm2 = vmpackc.low (!%p296_p9), %vm428_vm0, %vm428_vm0  ;;  %s1396_s13 = sshll.u32 (!%p296_p9), %s1460_s11, 4  ;;  %s1397_s13 = int_to_ptr.vmem [resolvable:$false] %s1396_s13 }
  0x14   : > { %1299 = vmatpush3.bf16.msra.mxu1 (!%p296_p9), %v1296_v4 }
  0x15   : > { %1301 = vmatprep.subr.bf16.mxu1 (!%p296_p9), %v1300_v6 }
  0x18   : > { %s347_s7 = scalar_select %p346_p10, %s1563_s24, 124  ;;  %1303 = vmatpush3.bf16.msra.mxu1 %v1300_v6 }
  0x19   : > { %1305 = vmatprep.subr.bf16.mxu1 %v1304_v9 }
  0x1a   : > { %s1082_s14 = sshll.u32 %s347_s7, 3  ;;  %s1398_s7 = scalar_lea.vmem %s1397_s13, 32 }
  0x1b   : > { %s1579_s20 = scalar_lea.vmem %s1743_s0, %s1082_s14  ;;  %s1584_s23 = scalar_lea.vmem %s1744_s1, %s1082_s14 }
  0x1c   : > { %v369_v12 = vld [vmem:[%s1579_s20] sm:$0xff]  ;;  %v370_v14 = vld [vmem:[%s1579_s20 + $0x8] sm:$0xff]  ;;  %v371_v17 = vld [vmem:[%s1579_s20 + $0x10] sm:$0xff] }
  0x1d   : > { %v385_v13 = vld [vmem:[%s1584_s23] sm:$0xff]  ;;  %v386_v16 = vld [vmem:[%s1584_s23 + $0x8] sm:$0xff]  ;;  %v387_v18 = vld [vmem:[%s1584_s23 + $0x10] sm:$0xff] }
  0x1e   : > { %v401_v15 = vmul.f32 %v385_v13, %v369_v12  ;;  %v402_v19 = vmul.f32 %v386_v16, %v370_v14  ;;  %v403_v20 = vmul.f32 %v387_v18, %v371_v17  ;;  %v372_v21 = vld [vmem:[%s1579_s20 + $0x18] sm:$0xff]  ;;  %v373_v23 = vld [vmem:[%s1579_s20 + $0x20] sm:$0xff]  ;;  %v374_v28 = vld [vmem:[%s1579_s20 + $0x28] sm:$0xff] }
  0x1f   : > { %v388_v22 = vld [vmem:[%s1584_s23 + $0x18] sm:$0xff]  ;;  %v389_v25 = vld [vmem:[%s1584_s23 + $0x20] sm:$0xff]  ;;  %v390_v29 = vld [vmem:[%s1584_s23 + $0x28] sm:$0xff] }
  0x20   : > { %1205 = vmatprep.mubr.msk.f32.mxu1 %vm428_vm0, %v401_v15  ;;  %v404_v26 = vmul.f32 %v388_v22, %v372_v21  ;;  %v405_v27 = vmul.f32 %v389_v25, %v373_v23  ;;  %v375_v30 = vld [vmem:[%s1579_s20 + $0x30] sm:$0xff]  ;;  %v406_v32 = vmul.f32 %v390_v29, %v374_v28  ;;  %v376_v34 = vld [vmem:[%s1579_s20 + $0x38] sm:$0xff]  ;;  %v377_v36 = vld [vmem:[%s1579_s20 + $0x40] sm:$0xff] }
  0x21   : > { %1206 = vmatmul.mubr.msk.f32.vlgmr.msra.gmra.mrb[0].mxu1 %vm428_vm0, %v402_v19  ;;  %v391_v31 = vld [vmem:[%s1584_s23 + $0x30] sm:$0xff]  ;;  %v392_v35 = vld [vmem:[%s1584_s23 + $0x38] sm:$0xff]  ;;  %v393_v37 = vld [vmem:[%s1584_s23 + $0x40] sm:$0xff] }
  0x22   : > { %1208 = vmatprep.mubr.msk.f32.mxu1 %vm428_vm0, %v403_v20  ;;  %1307 = vmatpush3.bf16.msra.mxu1 %v1304_v9  ;;  %v407_v33 = vmul.f32 %v391_v31, %v375_v30  ;;  %v408_v38 = vmul.f32 %v392_v35, %v376_v34  ;;  %v409_v39 = vmul.f32 %v393_v37, %v377_v36  ;;  %v378_v40 = vld [vmem:[%s1579_s20 + $0x48] sm:$0xff]  ;;  %v379_v42 = vld [vmem:[%s1579_s20 + $0x50] sm:$0xff]  ;;  %v380_v46 = vld [vmem:[%s1579_s20 + $0x58] sm:$0xff] }
  0x23   : > { %1309 = vmatprep.subr.bf16.mxu1 %v1308_v24  ;;  %v394_v41 = vld [vmem:[%s1584_s23 + $0x48] sm:$0xff]  ;;  %v395_v43 = vld [vmem:[%s1584_s23 + $0x50] sm:$0xff]  ;;  %v396_v47 = vld [vmem:[%s1584_s23 + $0x58] sm:$0xff] }
  0x24   : > { %v410_v44 = vmul.f32 %v394_v41, %v378_v40  ;;  %v411_v45 = vmul.f32 %v395_v43, %v379_v42  ;;  %v381_v48 = vld [vmem:[%s1579_s20 + $0x60] sm:$0xff]  ;;  %v412_v50 = vmul.f32 %v396_v47, %v380_v46  ;;  %v382_v52 = vld [vmem:[%s1579_s20 + $0x68] sm:$0xff]  ;;  %v383_v54 = vld [vmem:[%s1579_s20 + $0x70] sm:$0xff]  ;;  %v1456_v46 = vmov 0.0|0.0  }
  0x25   : > { %1209 = vmatmul.mubr.msk.f32.gmra.mrb[2].mxu1 %vm428_vm0, %v404_v26  ;;  %v397_v49 = vld [vmem:[%s1584_s23 + $0x60] sm:$0xff]  ;;  %v398_v53 = vld [vmem:[%s1584_s23 + $0x68] sm:$0xff]  ;;  %v399_v55 = vld [vmem:[%s1584_s23 + $0x70] sm:$0xff]  ;;  %1312 = vmatprep.subr.bf16.mxu0 %v1456_v46  ;;  %v1458_v47 = vmov 0.0  }
  0x26   : > { %1211 = vmatprep.mubr.msk.f32.mxu1 %vm428_vm0, %v405_v27  ;;  %1311 = vmatpush3.bf16.msra.mxu1 %v1308_v24  ;;  %v413_v51 = vmul.f32 %v397_v49, %v381_v48  ;;  %v414_v56 = vmul.f32 %v398_v53, %v382_v52  ;;  %v415_v57 = vmul.f32 %v399_v55, %v383_v54  ;;  %v384_v58 = vld [vmem:[%s1579_s20 + $0x78] sm:$0xff]  ;;  %v859_v48 = vld [vmem:[#allocation2] sm:$0x1]  ;;  %v1459_v49 = vmov 0   ;;  %s339_s20 = sand.u32 1, %s1446_s30  }
  0x27   : > { %v400_v59 = vld [vmem:[%s1584_s23 + $0x78] sm:$0xff]  ;;  %1293 = vmatprep.mubr.msk.f32.mxu0 %vm1457_vm1, %v1458_v47  ;;  %1387 = vset.pattern.permute.xlu0 %v1459_v49  ;;  %s340_s21 = scalar_lea.vmem [#allocation3], %s339_s20  ;;  %s998_s27 = scalar_lea.sflag [#allocation4], %s339_s20 }
  0x28   : > { %v416_v60 = vmul.f32 %v400_v59, %v384_v58  ;;  %862 = vperm.xlu0 %1387, %v859_v48   ;;  %s1010_s22 = sshll.u32 %s340_s21, 4  ;;  %s1703_s22 = int_to_ptr.vmem [resolvable:$true] %s1010_s22 }
  0x29   : > { %1212 = vmatmul.mubr.msk.f32.gmra.mrb[4].mxu1 %vm428_vm0, %v406_v32  ;;  %s1392_s28 = scalar_lea.vmem %s1703_s22, 16  ;;  %p1399_p0 = scmp.lt.s32.totalorder %s1703_s22, %s1397_s13 }
  0x2a   : > { %1214 = vmatprep.mubr.msk.f32.mxu1 %vm428_vm0, %v407_v33  ;;  %p1393_p11 = scmp.ne.s32.totalorder %s1703_s22, %s1392_s28  ;;  %p1400_p1 = scmp.lt.s32.totalorder %s1398_s7, %s1392_s28 }
  0x2c   : > { %p1394_p12 = pnand %p1393_p11, %p1544_p5  ;;  %p1401_p2 = por %p1400_p1, %p1399_p0 }
  0x2d   : > { %1215 = vmatmul.mubr.msk.f32.gmra.mrb[6].mxu1 %vm428_vm0, %v408_v38 }
  0x2e   : > { %1217 = vmatprep.mubr.msk.f32.mxu1 %vm428_vm0, %v409_v39  ;;  %p1395_p13 = pneg %p1394_p12 }
  0x30   : > { %p1402_p3 = pnand %p1401_p2, %p1395_p13 }
  0x31   : > { %1218 = vmatmul.mubr.msk.f32.gmra.mrb[8].mxu1 %vm428_vm0, %v410_v44 }
  0x32   : > { %1220 = vmatprep.mubr.msk.f32.mxu1 %vm428_vm0, %v411_v45 }
  0x35   : > { %1221 = vmatmul.mubr.msk.f32.gmra.mrb[10].mxu1 %vm428_vm0, %v412_v50  ;;  %v1102_v50 = vld [vmem:[%s1748_s5] ss:$0 sm:$0xff] }
  0x36   : > { %1223 = vmatprep.mubr.msk.f32.mxu1 %vm428_vm0, %v413_v51 }
  0x39   : > { %1224 = vmatmul.mubr.msk.f32.gmra.mrb[12].mxu1 %vm428_vm0, %v414_v56 }
  0x3a   : > { %1226 = vmatprep.mubr.msk.f32.mxu1 %vm428_vm0, %v415_v57 }
  0x3d   : > { %1227 = vmatmul.mubr.msk.f32.gmra.mrb[14].mxu1 %vm428_vm0, %v416_v60 }
  0xa7   : > { %v863_v49 = vpop.permute.xlu0 %862 }
  0xf4   : > { %v1207_v62 = vpop.f32.mrb[0].mxu1 }
  0xf5   : > { %v549_v63 = vadd.f32 %v1207_v62, %v1085_v61  ;;  %v543_v0 = vpop.f32.mrb[1].mxu1 }
  0xf6   : > { %v544_v1 = vadd.f32 %v1085_v61, %v543_v0 }
  0xf7   : > { %v623_v4 = vmax.f32 %v549_v63, 0.0 }
  0xf8   : > { %v622_v2 = vmax.f32 %v544_v1, 0.0  ;;  %v1210_v3 = vpop.f32.mrb[2].mxu1 }
  0xf9   : > { %v559_v5 = vadd.f32 %v1210_v3, %v1085_v61  ;;  %v553_v6 = vpop.f32.mrb[3].mxu1 }
  0xfa   : > { %v554_v7 = vadd.f32 %v1085_v61, %v553_v6  ;;  %1237 = vmatprep.mubr.msk.f32.mxu1 %vm428_vm0, %v622_v2 }
  0xfb   : > { %v625_v8 = vmax.f32 %v559_v5, 0.0  ;;  %1238 = vmatmul.mubr.msk.f32.vlgmr.msra.gmra.mrb[16].mxu1 %vm428_vm0, %v623_v4 }
  0xfc   : > { %v624_v9 = vmax.f32 %v554_v7, 0.0  ;;  %v1213_v10 = vpop.f32.mrb[4].mxu1 }
  0xfd   : > { %v569_v11 = vadd.f32 %v1213_v10, %v1085_v61  ;;  %v563_v12 = vpop.f32.mrb[5].mxu1 }
  0xfe   : > { %1240 = vmatprep.mubr.msk.f32.mxu1 %vm428_vm0, %v624_v9  ;;  %v564_v13 = vadd.f32 %v1085_v61, %v563_v12 }
  0xff   : > { %1241 = vmatmul.mubr.msk.f32.gmra.mrb[18].mxu1 %vm428_vm0, %v625_v8  ;;  %v627_v14 = vmax.f32 %v569_v11, 0.0 }
 0x100   : > { %v626_v15 = vmax.f32 %v564_v13, 0.0  ;;  %v1216_v16 = vpop.f32.mrb[6].mxu1 }
 0x101   : > { %v579_v17 = vadd.f32 %v1216_v16, %v1085_v61  ;;  %v573_v18 = vpop.f32.mrb[7].mxu1 }
 0x102   : > { %1243 = vmatprep.mubr.msk.f32.mxu1 %vm428_vm0, %v626_v15  ;;  %v574_v19 = vadd.f32 %v1085_v61, %v573_v18 }
 0x103   : > { %1244 = vmatmul.mubr.msk.f32.gmra.mrb[20].mxu1 %vm428_vm0, %v627_v14  ;;  %v629_v20 = vmax.f32 %v579_v17, 0.0 }
 0x104   : > { %v628_v21 = vmax.f32 %v574_v19, 0.0  ;;  %v1219_v22 = vpop.f32.mrb[8].mxu1 }
 0x105   : > { %v589_v23 = vadd.f32 %v1219_v22, %v1085_v61  ;;  %v583_v24 = vpop.f32.mrb[9].mxu1 }
 0x106   : > { %1246 = vmatprep.mubr.msk.f32.mxu1 %vm428_vm0, %v628_v21  ;;  %v584_v25 = vadd.f32 %v1085_v61, %v583_v24 }
 0x107   : > { %1247 = vmatmul.mubr.msk.f32.gmra.mrb[22].mxu1 %vm428_vm0, %v629_v20  ;;  %v631_v26 = vmax.f32 %v589_v23, 0.0 }
 0x108   : > { %v630_v27 = vmax.f32 %v584_v25, 0.0  ;;  %v1222_v28 = vpop.f32.mrb[10].mxu1 }
 0x109   : > { %v599_v29 = vadd.f32 %v1222_v28, %v1085_v61  ;;  %v593_v30 = vpop.f32.mrb[11].mxu1 }
 0x10a   : > { %1249 = vmatprep.mubr.msk.f32.mxu1 %vm428_vm0, %v630_v27  ;;  %v594_v31 = vadd.f32 %v1085_v61, %v593_v30 }
 0x10b   : > { %1250 = vmatmul.mubr.msk.f32.gmra.mrb[24].mxu1 %vm428_vm0, %v631_v26  ;;  %v633_v32 = vmax.f32 %v599_v29, 0.0 }
 0x10c   : > { %v632_v33 = vmax.f32 %v594_v31, 0.0  ;;  %v1225_v34 = vpop.f32.mrb[12].mxu1 }
 0x10d   : > { %v609_v35 = vadd.f32 %v1225_v34, %v1085_v61  ;;  %v603_v36 = vpop.f32.mrb[13].mxu1 }
 0x10e   : > { %1252 = vmatprep.mubr.msk.f32.mxu1 %vm428_vm0, %v632_v33  ;;  %v604_v37 = vadd.f32 %v1085_v61, %v603_v36 }
 0x10f   : > { %1253 = vmatmul.mubr.msk.f32.gmra.mrb[26].mxu1 %vm428_vm0, %v633_v32  ;;  %v635_v38 = vmax.f32 %v609_v35, 0.0 }
 0x110   : > { %v634_v39 = vmax.f32 %v604_v37, 0.0  ;;  %v1228_v40 = vpop.f32.mrb[14].mxu1 }
 0x111   : > { %v619_v41 = vadd.f32 %v1228_v40, %v1085_v61  ;;  %v613_v42 = vpop.f32.mrb[15].mxu1 }
 0x112   : > { %1255 = vmatprep.mubr.msk.f32.mxu1 %vm428_vm0, %v634_v39  ;;  %v614_v43 = vadd.f32 %v1085_v61, %v613_v42 }
 0x113   : > { %1256 = vmatmul.mubr.msk.f32.gmra.mrb[28].mxu1 %vm428_vm0, %v635_v38  ;;  %v637_v44 = vmax.f32 %v619_v41, 0.0 }
 0x114   : > { %v636_v45 = vmax.f32 %v614_v43, 0.0 }
 0x116   : > { %1258 = vmatprep.mubr.msk.f32.mxu1 %vm428_vm0, %v636_v45  ;;  %v865_v45 = vlaneseq }
 0x117   : > { %1259 = vmatmul.mubr.msk.f32.gmra.mrb[30].mxu1 %vm428_vm0, %v637_v44  ;;  %v858_v44 = vld [vmem:[%s1749_s6] sm:$0x1] }
 0x118   : > { %v866_v47 = vshrl.u32 %v865_v45, 7 }
 0x11a   : > { %v867_v48 = vsub.s32 0, %v866_v47 }
 0x1ce   : > { %v1239_v51 = vpop.f32.mrb[16].mxu1 }
 0x1cf   : > { %v769_v52 = vadd.f32 %v1239_v51, %v1102_v50  ;;  %v763_v53 = vpop.f32.mrb[17].mxu1 }
 0x1d0   : > { %v764_v54 = vadd.f32 %v1102_v50, %v763_v53 }
 0x1d1   : > { %v843_v55 = vmax.f32 %v769_v52, 0.0 }
 0x1d2   : > { %v842_v56 = vmax.f32 %v764_v54, 0.0  ;;  %v1242_v57 = vpop.f32.mrb[18].mxu1 }
 0x1d3   : > { %v779_v58 = vadd.f32 %v1242_v57, %v1102_v50  ;;  %v773_v59 = vpop.f32.mrb[19].mxu1 }
 0x1d4   : > { %v1313_v61 = vpack.c.bf16 %v843_v55, %v842_v56  ;;  %v774_v62 = vadd.f32 %v1102_v50, %v773_v59 }
 0x1d5   : > { %v845_v63 = vmax.f32 %v779_v58, 0.0 }
 0x1d6   : > { %v844_v0 = vmax.f32 %v774_v62, 0.0  ;;  %1315 = vmatpush3.bf16.xpose.msk.msra.mxu0 %vm1665_vm2, %v1313_v61  ;;  %v1245_v1 = vpop.f32.mrb[20].mxu1 }
 0x1d7   : > { %v789_v2 = vadd.f32 %v1245_v1, %v1102_v50  ;;  %v783_v3 = vpop.f32.mrb[21].mxu1  ;;  %1316 = vmatprep.subr.bf16.mxu0 %v1456_v46 }
 0x1d8   : > { %v1317_v4 = vpack.c.bf16 %v845_v63, %v844_v0  ;;  %v784_v5 = vadd.f32 %v1102_v50, %v783_v3 }
 0x1d9   : > { %v847_v6 = vmax.f32 %v789_v2, 0.0 }
 0x1da   : > { %v846_v7 = vmax.f32 %v784_v5, 0.0  ;;  %v1248_v8 = vpop.f32.mrb[22].mxu1 }
 0x1db   : > { %v799_v9 = vadd.f32 %v1248_v8, %v1102_v50  ;;  %v793_v10 = vpop.f32.mrb[23].mxu1 }
 0x1dc   : > { %v1321_v11 = vpack.c.bf16 %v847_v6, %v846_v7  ;;  %v794_v12 = vadd.f32 %v1102_v50, %v793_v10 }
 0x1dd   : > { %v849_v13 = vmax.f32 %v799_v9, 0.0 }
 0x1de   : > { %1319 = vmatpush3.bf16.xpose.msk.msra.mxu0 %vm1665_vm2, %v1317_v4  ;;  %v848_v14 = vmax.f32 %v794_v12, 0.0  ;;  %v1251_v15 = vpop.f32.mrb[24].mxu1 }
 0x1df   : > { %1320 = vmatprep.subr.bf16.mxu0 %v1456_v46  ;;  %v809_v16 = vadd.f32 %v1251_v15, %v1102_v50  ;;  %v803_v17 = vpop.f32.mrb[25].mxu1 }
 0x1e0   : > { %v1325_v18 = vpack.c.bf16 %v849_v13, %v848_v14  ;;  %v804_v19 = vadd.f32 %v1102_v50, %v803_v17 }
 0x1e1   : > { %v851_v20 = vmax.f32 %v809_v16, 0.0 }
 0x1e2   : > { %v850_v21 = vmax.f32 %v804_v19, 0.0  ;;  %v1254_v22 = vpop.f32.mrb[26].mxu1 }
 0x1e3   : > { %v819_v23 = vadd.f32 %v1254_v22, %v1102_v50  ;;  %v813_v24 = vpop.f32.mrb[27].mxu1 }
 0x1e4   : > { %v1329_v25 = vpack.c.bf16 %v851_v20, %v850_v21  ;;  %v814_v26 = vadd.f32 %v1102_v50, %v813_v24 }
 0x1e5   : > { %v853_v27 = vmax.f32 %v819_v23, 0.0 }
 0x1e6   : > { %1323 = vmatpush3.bf16.xpose.msk.msra.mxu0 %vm1665_vm2, %v1321_v11  ;;  %v852_v28 = vmax.f32 %v814_v26, 0.0  ;;  %v1257_v29 = vpop.f32.mrb[28].mxu1 }
 0x1e7   : > { %1324 = vmatprep.subr.bf16.mxu0 %v1456_v46  ;;  %v829_v30 = vadd.f32 %v1257_v29, %v1102_v50  ;;  %v823_v31 = vpop.f32.mrb[29].mxu1 }
 0x1e8   : > { %v1333_v32 = vpack.c.bf16 %v853_v27, %v852_v28  ;;  %v824_v33 = vadd.f32 %v1102_v50, %v823_v31 }
 0x1e9   : > { %v855_v34 = vmax.f32 %v829_v30, 0.0 }
 0x1ea   : > { %v854_v35 = vmax.f32 %v824_v33, 0.0  ;;  %v1260_v36 = vpop.f32.mrb[30].mxu1 }
 0x1eb   : > { %v839_v37 = vadd.f32 %v1260_v36, %v1102_v50  ;;  %v833_v38 = vpop.f32.mrb[31].mxu1 }
 0x1ec   : > { %v1337_v39 = vpack.c.bf16 %v855_v34, %v854_v35  ;;  %v834_v40 = vadd.f32 %v1102_v50, %v833_v38  ;;  %v868_v50 = vrot.slane %v863_v49, %v867_v48 }
 0x1ed   : > { %v857_v41 = vmax.f32 %v839_v37, 0.0 }
 0x1ee   : > { %1327 = vmatpush3.bf16.xpose.msk.msra.mxu0 %vm1665_vm2, %v1325_v18  ;;  %v856_v42 = vmax.f32 %v834_v40, 0.0 }
 0x1ef   : > { %1328 = vmatprep.subr.bf16.mxu0 %v1456_v46 }
 0x1f0   : > { %v1341_v43 = vpack.c.bf16 %v857_v41, %v856_v42 }
 0x1f6   : > { %1331 = vmatpush3.bf16.xpose.msk.msra.mxu0 %vm1665_vm2, %v1329_v25 }
 0x1f7   : > { %1332 = vmatprep.subr.bf16.mxu0 %v1456_v46 }
 0x1fe   : > { %1335 = vmatpush3.bf16.xpose.msk.msra.mxu0 %vm1665_vm2, %v1333_v32 }
 0x1ff   : > { %1336 = vmatprep.subr.bf16.mxu0 %v1456_v46 }
 0x206   : > { %1339 = vmatpush3.bf16.xpose.msk.msra.mxu0 %vm1665_vm2, %v1337_v39 }
 0x207   : > { %1340 = vmatprep.subr.bf16.mxu0 %v1456_v46 }
 0x20e   : > { %1343 = vmatpush3.bf16.xpose.msk.msra.mxu0 %vm1665_vm2, %v1341_v43 }
 0x215   : > { %1294 = vmatmul.mubr.msk.f32.vlgmr.msra.gmra.mrb[0].mxu0 %vm428_vm0, %v858_v44 }
 0x2e8   : > { %v986_v51 = vpop.f32.mrb[0].mxu0 }
 0x2e9   : > { %v987_v52 = vadd.f32 %v986_v51, %v868_v50  ;;  %v1295_v53 = vpop.f32.mrb[1].mxu0 }
 0x2eb   : > { %v1136_v46 = vmul.f32 -1.442695, %v987_v52 }
 0x2ed   : > { %1388 = vpow2.f32 %v1136_v46 }
 0x2f7   : > { %v1389_v54 = vpop.eup %1388 }
 0x2f8   : > { %v993_v55 = vadd.f32 1.0, %v1389_v54 }
 0x2fa   : > { %1390 = vrcp.f32 %v993_v55 }
 0x304   : > { %v1391_v56 = vpop.eup %1390 }
 0x305   : > { %996 = vst [vmem:[%s340_s21] sm:$0x1] %v1391_v56 }
 0x306   : > { %1405 = shalt.err (!%p1402_p3)
}
 0x307   : > { %s1406_s24 = scalar_lea.hbm %s1701_s26, 16  ;;  %s1410_s19 = scalar_lea.hbm %s1751_s8, 128 }
 0x308   : > { %p1407_p4 = scmp.ne.s32.totalorder %s1701_s26, %s1406_s24  ;;  %p1411_p9 = scmp.lt.u32.totalorder %s1701_s26, %s1751_s8 }
 0x309   : > { %p1412_p10 = scmp.lt.u32.totalorder %s1410_s19, %s1406_s24  ;;  %p1414_p12 = scmp.lt.u32.totalorder %s1406_s24, %s1701_s26 }
 0x30a   : > { %p1408_p7 = pnand %p1407_p4, %p1544_p5 }
 0x30b   : > { %p1413_p11 = por %p1412_p10, %p1411_p9 }
 0x30c   : > { %p1409_p8 = pneg %p1408_p7 }
 0x30d   : > { %p1415_p13 = por %p1414_p12, %p1413_p11 }
 0x30f   : > { %p1416_p0 = pnand %p1415_p13, %p1409_p8 }
 0x311   : > { %1419 = shalt.err (!%p1416_p0)
}
 0x312   : > { %1344 = dma.vmem_to_hbm [thread:$0]  (%p1544_p5), %s1703_s22, 16, %s1701_s26, %s998_s27  }
 0x313 PF: > { %p1350_p1 = scmp.ge.s32.totalorder %s1454_s10, 2  ;;  %s1022_s23 = sand.u32 1, %s1442_s29  }
 0x314   : > { %s1023_s25 = scalar_lea.sflag [#allocation4], %s1022_s23 }
 0x315   : > { %p1347_p2 = pnand %p1350_p1, %p1548_p6 }
 0x317   : > { %1437 = dma.done.wait (!%p1347_p2), %s1023_s25, 16  }
 0x318   : > { %1439 = vsyncadd (!%p1347_p2), %s1023_s25, 4294967280  ;;  %p20_p3 = scmp.ge.s32.totalorder %s1532_s12, 10   ;;  %s1756_s29 = smov %s1446_s30 }
 0x319   : > { %s1757_s30 = smov %s1450_s9  ;;  %s1758_s9 = smov %s1542_s15 }
 0x31a   : > { %s1759_s10 = smov %s1532_s12  ;;  %22 = sbr.rel (!%p20_p3) target bundleno = 6 (0x6), region = 90 }
 0x321   :  { %1027 = vsyncpa [#allocation4], 1 }
 0x322   :  { %1029 = vsyncpa [#allocation4 + $0x1], 1 }

</bundles_post_ra>
